<compile_context>
chip_gen: v7x
topology: tpu7x:2x2x1
jax: 0.10.0
libtpu: 0.0.40
codegen_flags: <defaults>
</compile_context>

<pallas_src>
import numpy as np
import jax
import jax.numpy as jnp
from jax import lax
from jax.experimental import pallas as pl
from jax.experimental.pallas import tpu as pltpu

LEAKY_SLOPE = 0.01   # torch.nn.functional.leaky_relu default
BN_EPS = 1e-5        # torch.nn.BatchNorm1d default


def _downblock_kernel(x_ref, mask_ref, w1_ref, b1_ref, g1_ref, bt1_ref,
                      w2_ref, b2_ref, g2_ref, bt2_ref, out_ref, pad_ref):
    NL, C = x_ref.shape          # folded (batch*length, channels)
    K = mask_ref.shape[0]        # conv kernel size (static)
    pad = K - 2                  # PyTorch padding = kernel_size - 2
    NLp = out_ref.shape[0]       # folded pooled length (N * L // 2)
    f32 = jnp.float32
    inv_cnt = 1.0 / NL           # BN divisor: N*L elements per channel

    # Zero the staging buffer once; the convs only overwrite rows
    # [pad, pad + NL), so the border rows stay zero (the Conv1d zero padding).
    pad_ref[...] = jnp.zeros((NL + 2 * pad, C), f32)

    x = x_ref[...]

    def conv(v, w_ref, b_ref):
        # Stage the input; tap k is then the contiguous row window [k, k+NL).
        pad_ref[pad:pad + NL, :] = v
        acc = None
        for k in range(K):                       # K is small and static
            tap = pad_ref[k:k + NL, :]
            if k != pad:                         # zero cross-sample leakage
                tap = tap * mask_ref[k]
            t = jnp.dot(tap, w_ref[k], preferred_element_type=f32)
            acc = t if acc is None else acc + t
        return acc + b_ref[...]                  # bias added once (broadcast)

    def bn_leaky(y, g_ref, bt_ref, residual=None):
        # Training-mode BN (biased variance, two-pass form) fused with the
        # affine transform, optional residual add, and leaky-relu.
        mean = jnp.sum(y, axis=0, keepdims=True) * inv_cnt
        d = y - mean
        var = jnp.sum(d * d, axis=0, keepdims=True) * inv_cnt
        z = d * (lax.rsqrt(var + BN_EPS) * g_ref[...]) + bt_ref[...]
        if residual is not None:
            z = z + residual
        return jnp.maximum(z, LEAKY_SLOPE * z)   # leaky_relu

    h = bn_leaky(conv(x, w1_ref, b1_ref), g1_ref, bt1_ref)
    h = bn_leaky(conv(h, w2_ref, b2_ref), g2_ref, bt2_ref, residual=x)

    # MaxPool1d(kernel_size=2): pairwise max of adjacent rows, then take every
    # second row with a strided sublane read (no selection matmuls).
    pad_ref[pad:pad + NL, :] = h
    m = jnp.maximum(h, pad_ref[pad + 1:pad + 1 + NL, :])   # max(h[j], h[j+1])
    pad_ref[0:NL, :] = m
    out_ref[...] = pad_ref[pl.ds(0, NLp, stride=2), :]


def downblock_forward(x, params):
    """x: (N, C, L) f32; params = (w1, b1, g1, bt1, w2, b2, g2, bt2), PyTorch layout.

    Matches DownBlock.forward() in training mode (batch statistics in BN).
    """
    N, C, L = x.shape
    w1, b1, g1, bt1, w2, b2, g2, bt2 = params
    K = w1.shape[-1]
    assert K == 3, "residual DownBlock needs kernel_size=3 (conv out length == in length)"
    assert w1.shape[0] == w1.shape[1] == C and w2.shape[0] == w2.shape[1] == C
    assert L % 2 == 0, "MaxPool1d(2) needs an even length"
    pad = K - 2
    NL, Lp = N * L, L // 2
    NLp = N * Lp

    # ---- layout plumbing (outside the kernel) ----
    # fold batch into rows: xf[n*L + l, c] = x[n, c, l]
    xf = jnp.transpose(x.astype(jnp.float32), (0, 2, 1)).reshape(NL, C)
    # per-tap boundary masks: zero where a tap would cross a sample boundary
    l_idx = jnp.arange(NL, dtype=jnp.int32) % L
    masks = jnp.stack(
        [((l_idx + (k - pad) >= 0) & (l_idx + (k - pad) < L)).astype(jnp.float32)
         for k in range(K)])[:, :, None]                       # (K, NL, 1)
    # weights repacked to (K, Cin, Cout): tap k contracts as (NL,Cin)@(Cin,Cout)
    wk = lambda w: jnp.transpose(w.astype(jnp.float32), (2, 1, 0))
    row = lambda v: v.reshape(1, C).astype(jnp.float32)        # per-channel params on lanes

    args = (xf, masks, wk(w1), row(b1), row(g1), row(bt1),
            wk(w2), row(b2), row(g2), row(bt2))

    def full_spec(a):
        nd = a.ndim
        return pl.BlockSpec(a.shape, lambda i, _nd=nd: (0,) * _nd)

    out_folded = pl.pallas_call(
        _downblock_kernel,
        out_shape=jax.ShapeDtypeStruct((NLp, C), jnp.float32),
        grid=(1,),
        in_specs=[full_spec(a) for a in args],
        out_specs=pl.BlockSpec((NLp, C), lambda i: (0, 0)),
        scratch_shapes=[pltpu.VMEM((NL + 2 * pad, C), jnp.float32)],
        compiler_params=pltpu.CompilerParams(dimension_semantics=("arbitrary",)),
    )(*args)

    # unfold: out[n, c, lp] = out_folded[n*Lp + lp, c]
    return jnp.transpose(out_folded.reshape(N, Lp, C), (0, 2, 1))


def ref_downblock(x, params):
    """Pure-JAX reference (same semantics as the PyTorch module in training mode)."""
    w1, b1, g1, bt1, w2, b2, g2, bt2 = params
    K = w1.shape[-1]
    pad = K - 2

    def conv(v, w, b):
        y = lax.conv_general_dilated(v, w, window_strides=(1,), padding=[(pad, pad)],
                                     dimension_numbers=("NCH", "OIH", "NCH"))
        return y + b[None, :, None]

    def bn(y, gamma, beta):
        mean = y.mean(axis=(0, 2), keepdims=True)
        var = ((y - mean) ** 2).mean(axis=(0, 2), keepdims=True)
        return (y - mean) * lax.rsqrt(var + BN_EPS) * gamma[None, :, None] + beta[None, :, None]

    def leaky(v):
        return jnp.where(v >= 0, v, LEAKY_SLOPE * v)

    h = leaky(bn(conv(x, w1, b1), g1, bt1))
    h = bn(conv(h, w2, b2), g2, bt2)
    h = leaky(h + x)
    N, C, L = h.shape
    return h[:, :, :(L // 2) * 2].reshape(N, C, L // 2, 2).max(axis=-1)


if __name__ == "__main__":
    N, C, L, K = 2, 4, 16, 3

    key = jax.random.PRNGKey(0)
    ks = jax.random.split(key, 9)
    scale = 1.0 / np.sqrt(C * K)   # PyTorch Conv1d default init range
    w1 = jax.random.uniform(ks[0], (C, C, K), jnp.float32, -scale, scale)
    b1 = jax.random.uniform(ks[1], (C,), jnp.float32, -scale, scale)
    w2 = jax.random.uniform(ks[2], (C, C, K), jnp.float32, -scale, scale)
    b2 = jax.random.uniform(ks[3], (C,), jnp.float32, -scale, scale)
    g1 = 1.0 + 0.1 * jax.random.normal(ks[4], (C,), jnp.float32)
    bt1 = 0.1 * jax.random.normal(ks[5], (C,), jnp.float32)
    g2 = 1.0 + 0.1 * jax.random.normal(ks[6], (C,), jnp.float32)
    bt2 = 0.1 * jax.random.normal(ks[7], (C,), jnp.float32)
    x = jax.random.normal(ks[8], (N, C, L), jnp.float32)

    params = (w1, b1, g1, bt1, w2, b2, g2, bt2)

    out = downblock_forward(x, params)
    out = jax.block_until_ready(out)

    ref = ref_downblock(x, params)
    np.testing.assert_allclose(np.asarray(out), np.asarray(ref), rtol=1e-3, atol=1e-4)

    print("KERNEL_OK")
</pallas_src>

<mosaic_0001>
module attributes {stable_mosaic.version = 11 : i64} {
  func.func @_downblock_kernel(%arg0: i32, %arg1: memref<32x4xf32, #tpu.memory_space<vmem>>, %arg2: memref<3x32x1xf32, #tpu.memory_space<vmem>>, %arg3: memref<3x4x4xf32, #tpu.memory_space<vmem>>, %arg4: memref<1x4xf32, #tpu.memory_space<vmem>>, %arg5: memref<1x4xf32, #tpu.memory_space<vmem>>, %arg6: memref<1x4xf32, #tpu.memory_space<vmem>>, %arg7: memref<3x4x4xf32, #tpu.memory_space<vmem>>, %arg8: memref<1x4xf32, #tpu.memory_space<vmem>>, %arg9: memref<1x4xf32, #tpu.memory_space<vmem>>, %arg10: memref<1x4xf32, #tpu.memory_space<vmem>>, %arg11: memref<16x4xf32, #tpu.memory_space<vmem>>, %arg12: memref<34x4xf32, #tpu.memory_space<vmem>>) attributes {dimension_semantics = [#tpu.dimension_semantics<arbitrary>], iteration_bounds = array<i64: 1>, scalar_prefetch = 0 : i64, scratch_operands = 1 : i64, tpu.core_type = #tpu.core_type<tc>, window_params = [{pipeline_mode = #tpu.pipeline_mode<synchronous>, transform_indices = @transform_0, window_bounds = array<i64: 32, 4>}, {pipeline_mode = #tpu.pipeline_mode<synchronous>, transform_indices = @transform_1, window_bounds = array<i64: 3, 32, 1>}, {pipeline_mode = #tpu.pipeline_mode<synchronous>, transform_indices = @transform_2, window_bounds = array<i64: 3, 4, 4>}, {pipeline_mode = #tpu.pipeline_mode<synchronous>, transform_indices = @transform_3, window_bounds = array<i64: 1, 4>}, {pipeline_mode = #tpu.pipeline_mode<synchronous>, transform_indices = @transform_4, window_bounds = array<i64: 1, 4>}, {pipeline_mode = #tpu.pipeline_mode<synchronous>, transform_indices = @transform_5, window_bounds = array<i64: 1, 4>}, {pipeline_mode = #tpu.pipeline_mode<synchronous>, transform_indices = @transform_6, window_bounds = array<i64: 3, 4, 4>}, {pipeline_mode = #tpu.pipeline_mode<synchronous>, transform_indices = @transform_7, window_bounds = array<i64: 1, 4>}, {pipeline_mode = #tpu.pipeline_mode<synchronous>, transform_indices = @transform_8, window_bounds = array<i64: 1, 4>}, {pipeline_mode = #tpu.pipeline_mode<synchronous>, transform_indices = @transform_9, window_bounds = array<i64: 1, 4>}, {pipeline_mode = #tpu.pipeline_mode<synchronous>, transform_indices = @transform_10, window_bounds = array<i64: 16, 4>}]} {
    %cst = arith.constant 0.000000e+00 : f32
    %0 = vector.broadcast %cst : f32 to vector<34x4xf32>
    %c0 = arith.constant 0 : index
    %c0_0 = arith.constant 0 : index
    %1 = vector.load %arg12[%c0, %c0_0] : memref<34x4xf32, #tpu.memory_space<vmem>>, vector<34x4xf32>
    tpu.vector_store %arg12[%c0, %c0_0], %0 {strides = array<i32>} : memref<34x4xf32, #tpu.memory_space<vmem>>, vector<34x4xf32>,
    %c0_1 = arith.constant 0 : index
    %c0_2 = arith.constant 0 : index
    %2 = vector.load %arg1[%c0_1, %c0_2] : memref<32x4xf32, #tpu.memory_space<vmem>>, vector<32x4xf32>
    %c1 = arith.constant 1 : index
    %c0_3 = arith.constant 0 : index
    %3 = vector.load %arg12[%c1, %c0_3] : memref<34x4xf32, #tpu.memory_space<vmem>>, vector<32x4xf32>
    tpu.vector_store %arg12[%c1, %c0_3], %2 {strides = array<i32>} : memref<34x4xf32, #tpu.memory_space<vmem>>, vector<32x4xf32>,
    %c0_4 = arith.constant 0 : index
    %c0_5 = arith.constant 0 : index
    %4 = vector.load %arg12[%c0_4, %c0_5] : memref<34x4xf32, #tpu.memory_space<vmem>>, vector<32x4xf32>
    %c0_6 = arith.constant 0 : index
    %c0_7 = arith.constant 0 : index
    %c0_8 = arith.constant 0 : index
    %5 = vector.load %arg2[%c0_6, %c0_7, %c0_8] : memref<3x32x1xf32, #tpu.memory_space<vmem>>, vector<1x32x1xf32>
    %6 = vector.shape_cast %5 : vector<1x32x1xf32> to vector<32x1xf32>
    %7 = vector.broadcast %6 : vector<32x1xf32> to vector<32x4xf32>
    %8 = arith.mulf %4, %7 : vector<32x4xf32>
    %c0_9 = arith.constant 0 : index
    %c0_10 = arith.constant 0 : index
    %c0_11 = arith.constant 0 : index
    %9 = vector.load %arg3[%c0_9, %c0_10, %c0_11] : memref<3x4x4xf32, #tpu.memory_space<vmem>>, vector<1x4x4xf32>
    %10 = vector.shape_cast %9 : vector<1x4x4xf32> to vector<4x4xf32>
    %cst_12 = arith.constant dense<0.000000e+00> : vector<32x4xf32>
    %11 = tpu.matmul %8, %10, %cst_12 {dimension_numbers = #tpu.dot_dimension_numbers<[1], [0], [0], [1], [0, 0, 1, 1], [], []>} : vector<32x4xf32>, vector<4x4xf32>, vector<32x4xf32> -> vector<32x4xf32>
    %c1_13 = arith.constant 1 : index
    %c0_14 = arith.constant 0 : index
    %12 = vector.load %arg12[%c1_13, %c0_14] : memref<34x4xf32, #tpu.memory_space<vmem>>, vector<32x4xf32>
    %c1_15 = arith.constant 1 : index
    %c0_16 = arith.constant 0 : index
    %c0_17 = arith.constant 0 : index
    %13 = vector.load %arg3[%c1_15, %c0_16, %c0_17] : memref<3x4x4xf32, #tpu.memory_space<vmem>>, vector<1x4x4xf32>
    %14 = vector.shape_cast %13 : vector<1x4x4xf32> to vector<4x4xf32>
    %cst_18 = arith.constant dense<0.000000e+00> : vector<32x4xf32>
    %15 = tpu.matmul %12, %14, %cst_18 {dimension_numbers = #tpu.dot_dimension_numbers<[1], [0], [0], [1], [0, 0, 1, 1], [], []>} : vector<32x4xf32>, vector<4x4xf32>, vector<32x4xf32> -> vector<32x4xf32>
    %16 = arith.addf %11, %15 : vector<32x4xf32>
    %c2 = arith.constant 2 : index
    %c0_19 = arith.constant 0 : index
    %17 = vector.load %arg12[%c2, %c0_19] : memref<34x4xf32, #tpu.memory_space<vmem>>, vector<32x4xf32>
    %c2_20 = arith.constant 2 : index
    %c0_21 = arith.constant 0 : index
    %c0_22 = arith.constant 0 : index
    %18 = vector.load %arg2[%c2_20, %c0_21, %c0_22] : memref<3x32x1xf32, #tpu.memory_space<vmem>>, vector<1x32x1xf32>
    %19 = vector.shape_cast %18 : vector<1x32x1xf32> to vector<32x1xf32>
    %20 = vector.broadcast %19 : vector<32x1xf32> to vector<32x4xf32>
    %21 = arith.mulf %17, %20 : vector<32x4xf32>
    %c2_23 = arith.constant 2 : index
    %c0_24 = arith.constant 0 : index
    %c0_25 = arith.constant 0 : index
    %22 = vector.load %arg3[%c2_23, %c0_24, %c0_25] : memref<3x4x4xf32, #tpu.memory_space<vmem>>, vector<1x4x4xf32>
    %23 = vector.shape_cast %22 : vector<1x4x4xf32> to vector<4x4xf32>
    %cst_26 = arith.constant dense<0.000000e+00> : vector<32x4xf32>
    %24 = tpu.matmul %21, %23, %cst_26 {dimension_numbers = #tpu.dot_dimension_numbers<[1], [0], [0], [1], [0, 0, 1, 1], [], []>} : vector<32x4xf32>, vector<4x4xf32>, vector<32x4xf32> -> vector<32x4xf32>
    %25 = arith.addf %16, %24 : vector<32x4xf32>
    %c0_27 = arith.constant 0 : index
    %c0_28 = arith.constant 0 : index
    %26 = vector.load %arg4[%c0_27, %c0_28] : memref<1x4xf32, #tpu.memory_space<vmem>>, vector<1x4xf32>
    %27 = vector.broadcast %26 : vector<1x4xf32> to vector<32x4xf32>
    %28 = arith.addf %25, %27 : vector<32x4xf32>
    %cst_29 = arith.constant dense<0.000000e+00> : vector<4xf32>
    %29 = vector.multi_reduction <add>, %28, %cst_29 [0] : vector<32x4xf32> to vector<4xf32>
    %30 = vector.shape_cast %29 : vector<4xf32> to vector<1x4xf32>
    %cst_30 = arith.constant 3.125000e-02 : f32
    %31 = vector.broadcast %cst_30 : f32 to vector<1x4xf32>
    %32 = arith.mulf %30, %31 : vector<1x4xf32>
    %33 = vector.broadcast %32 : vector<1x4xf32> to vector<32x4xf32>
    %34 = arith.subf %28, %33 : vector<32x4xf32>
    %35 = arith.mulf %34, %34 : vector<32x4xf32>
    %cst_31 = arith.constant dense<0.000000e+00> : vector<4xf32>
    %36 = vector.multi_reduction <add>, %35, %cst_31 [0] : vector<32x4xf32> to vector<4xf32>
    %37 = vector.shape_cast %36 : vector<4xf32> to vector<1x4xf32>
    %cst_32 = arith.constant 3.125000e-02 : f32
    %38 = vector.broadcast %cst_32 : f32 to vector<1x4xf32>
    %39 = arith.mulf %37, %38 : vector<1x4xf32>
    %cst_33 = arith.constant 9.99999974E-6 : f32
    %40 = vector.broadcast %cst_33 : f32 to vector<1x4xf32>
    %41 = arith.addf %39, %40 : vector<1x4xf32>
    %42 = math.rsqrt %41 : vector<1x4xf32>
    %c0_34 = arith.constant 0 : index
    %c0_35 = arith.constant 0 : index
    %43 = vector.load %arg5[%c0_34, %c0_35] : memref<1x4xf32, #tpu.memory_space<vmem>>, vector<1x4xf32>
    %44 = arith.mulf %42, %43 : vector<1x4xf32>
    %45 = vector.broadcast %44 : vector<1x4xf32> to vector<32x4xf32>
    %46 = arith.mulf %34, %45 : vector<32x4xf32>
    %c0_36 = arith.constant 0 : index
    %c0_37 = arith.constant 0 : index
    %47 = vector.load %arg6[%c0_36, %c0_37] : memref<1x4xf32, #tpu.memory_space<vmem>>, vector<1x4xf32>
    %48 = vector.broadcast %47 : vector<1x4xf32> to vector<32x4xf32>
    %49 = arith.addf %46, %48 : vector<32x4xf32>
    %cst_38 = arith.constant 0.00999999977 : f32
    %50 = vector.broadcast %cst_38 : f32 to vector<32x4xf32>
    %51 = arith.mulf %50, %49 : vector<32x4xf32>
    %52 = arith.maximumf %49, %51 : vector<32x4xf32>
    %c1_39 = arith.constant 1 : index
    %c0_40 = arith.constant 0 : index
    %53 = vector.load %arg12[%c1_39, %c0_40] : memref<34x4xf32, #tpu.memory_space<vmem>>, vector<32x4xf32>
    tpu.vector_store %arg12[%c1_39, %c0_40], %52 {strides = array<i32>} : memref<34x4xf32, #tpu.memory_space<vmem>>, vector<32x4xf32>,
    %c0_41 = arith.constant 0 : index
    %c0_42 = arith.constant 0 : index
    %54 = vector.load %arg12[%c0_41, %c0_42] : memref<34x4xf32, #tpu.memory_space<vmem>>, vector<32x4xf32>
    %c0_43 = arith.constant 0 : index
    %c0_44 = arith.constant 0 : index
    %c0_45 = arith.constant 0 : index
    %55 = vector.load %arg2[%c0_43, %c0_44, %c0_45] : memref<3x32x1xf32, #tpu.memory_space<vmem>>, vector<1x32x1xf32>
    %56 = vector.shape_cast %55 : vector<1x32x1xf32> to vector<32x1xf32>
    %57 = vector.broadcast %56 : vector<32x1xf32> to vector<32x4xf32>
    %58 = arith.mulf %54, %57 : vector<32x4xf32>
    %c0_46 = arith.constant 0 : index
    %c0_47 = arith.constant 0 : index
    %c0_48 = arith.constant 0 : index
    %59 = vector.load %arg7[%c0_46, %c0_47, %c0_48] : memref<3x4x4xf32, #tpu.memory_space<vmem>>, vector<1x4x4xf32>
    %60 = vector.shape_cast %59 : vector<1x4x4xf32> to vector<4x4xf32>
    %cst_49 = arith.constant dense<0.000000e+00> : vector<32x4xf32>
    %61 = tpu.matmul %58, %60, %cst_49 {dimension_numbers = #tpu.dot_dimension_numbers<[1], [0], [0], [1], [0, 0, 1, 1], [], []>} : vector<32x4xf32>, vector<4x4xf32>, vector<32x4xf32> -> vector<32x4xf32>
    %c1_50 = arith.constant 1 : index
    %c0_51 = arith.constant 0 : index
    %62 = vector.load %arg12[%c1_50, %c0_51] : memref<34x4xf32, #tpu.memory_space<vmem>>, vector<32x4xf32>
    %c1_52 = arith.constant 1 : index
    %c0_53 = arith.constant 0 : index
    %c0_54 = arith.constant 0 : index
    %63 = vector.load %arg7[%c1_52, %c0_53, %c0_54] : memref<3x4x4xf32, #tpu.memory_space<vmem>>, vector<1x4x4xf32>
    %64 = vector.shape_cast %63 : vector<1x4x4xf32> to vector<4x4xf32>
    %cst_55 = arith.constant dense<0.000000e+00> : vector<32x4xf32>
    %65 = tpu.matmul %62, %64, %cst_55 {dimension_numbers = #tpu.dot_dimension_numbers<[1], [0], [0], [1], [0, 0, 1, 1], [], []>} : vector<32x4xf32>, vector<4x4xf32>, vector<32x4xf32> -> vector<32x4xf32>
    %66 = arith.addf %61, %65 : vector<32x4xf32>
    %c2_56 = arith.constant 2 : index
    %c0_57 = arith.constant 0 : index
    %67 = vector.load %arg12[%c2_56, %c0_57] : memref<34x4xf32, #tpu.memory_space<vmem>>, vector<32x4xf32>
    %c2_58 = arith.constant 2 : index
    %c0_59 = arith.constant 0 : index
    %c0_60 = arith.constant 0 : index
    %68 = vector.load %arg2[%c2_58, %c0_59, %c0_60] : memref<3x32x1xf32, #tpu.memory_space<vmem>>, vector<1x32x1xf32>
    %69 = vector.shape_cast %68 : vector<1x32x1xf32> to vector<32x1xf32>
    %70 = vector.broadcast %69 : vector<32x1xf32> to vector<32x4xf32>
    %71 = arith.mulf %67, %70 : vector<32x4xf32>
    %c2_61 = arith.constant 2 : index
    %c0_62 = arith.constant 0 : index
    %c0_63 = arith.constant 0 : index
    %72 = vector.load %arg7[%c2_61, %c0_62, %c0_63] : memref<3x4x4xf32, #tpu.memory_space<vmem>>, vector<1x4x4xf32>
    %73 = vector.shape_cast %72 : vector<1x4x4xf32> to vector<4x4xf32>
    %cst_64 = arith.constant dense<0.000000e+00> : vector<32x4xf32>
    %74 = tpu.matmul %71, %73, %cst_64 {dimension_numbers = #tpu.dot_dimension_numbers<[1], [0], [0], [1], [0, 0, 1, 1], [], []>} : vector<32x4xf32>, vector<4x4xf32>, vector<32x4xf32> -> vector<32x4xf32>
    %75 = arith.addf %66, %74 : vector<32x4xf32>
    %c0_65 = arith.constant 0 : index
    %c0_66 = arith.constant 0 : index
    %76 = vector.load %arg8[%c0_65, %c0_66] : memref<1x4xf32, #tpu.memory_space<vmem>>, vector<1x4xf32>
    %77 = vector.broadcast %76 : vector<1x4xf32> to vector<32x4xf32>
    %78 = arith.addf %75, %77 : vector<32x4xf32>
    %cst_67 = arith.constant dense<0.000000e+00> : vector<4xf32>
    %79 = vector.multi_reduction <add>, %78, %cst_67 [0] : vector<32x4xf32> to vector<4xf32>
    %80 = vector.shape_cast %79 : vector<4xf32> to vector<1x4xf32>
    %cst_68 = arith.constant 3.125000e-02 : f32
    %81 = vector.broadcast %cst_68 : f32 to vector<1x4xf32>
    %82 = arith.mulf %80, %81 : vector<1x4xf32>
    %83 = vector.broadcast %82 : vector<1x4xf32> to vector<32x4xf32>
    %84 = arith.subf %78, %83 : vector<32x4xf32>
    %85 = arith.mulf %84, %84 : vector<32x4xf32>
    %cst_69 = arith.constant dense<0.000000e+00> : vector<4xf32>
    %86 = vector.multi_reduction <add>, %85, %cst_69 [0] : vector<32x4xf32> to vector<4xf32>
    %87 = vector.shape_cast %86 : vector<4xf32> to vector<1x4xf32>
    %cst_70 = arith.constant 3.125000e-02 : f32
    %88 = vector.broadcast %cst_70 : f32 to vector<1x4xf32>
    %89 = arith.mulf %87, %88 : vector<1x4xf32>
    %cst_71 = arith.constant 9.99999974E-6 : f32
    %90 = vector.broadcast %cst_71 : f32 to vector<1x4xf32>
    %91 = arith.addf %89, %90 : vector<1x4xf32>
    %92 = math.rsqrt %91 : vector<1x4xf32>
    %c0_72 = arith.constant 0 : index
    %c0_73 = arith.constant 0 : index
    %93 = vector.load %arg9[%c0_72, %c0_73] : memref<1x4xf32, #tpu.memory_space<vmem>>, vector<1x4xf32>
    %94 = arith.mulf %92, %93 : vector<1x4xf32>
    %95 = vector.broadcast %94 : vector<1x4xf32> to vector<32x4xf32>
    %96 = arith.mulf %84, %95 : vector<32x4xf32>
    %c0_74 = arith.constant 0 : index
    %c0_75 = arith.constant 0 : index
    %97 = vector.load %arg10[%c0_74, %c0_75] : memref<1x4xf32, #tpu.memory_space<vmem>>, vector<1x4xf32>
    %98 = vector.broadcast %97 : vector<1x4xf32> to vector<32x4xf32>
    %99 = arith.addf %96, %98 : vector<32x4xf32>
    %100 = arith.addf %99, %2 : vector<32x4xf32>
    %cst_76 = arith.constant 0.00999999977 : f32
    %101 = vector.broadcast %cst_76 : f32 to vector<32x4xf32>
    %102 = arith.mulf %101, %100 : vector<32x4xf32>
    %103 = arith.maximumf %100, %102 : vector<32x4xf32>
    %c1_77 = arith.constant 1 : index
    %c0_78 = arith.constant 0 : index
    %104 = vector.load %arg12[%c1_77, %c0_78] : memref<34x4xf32, #tpu.memory_space<vmem>>, vector<32x4xf32>
    tpu.vector_store %arg12[%c1_77, %c0_78], %103 {strides = array<i32>} : memref<34x4xf32, #tpu.memory_space<vmem>>, vector<32x4xf32>,
    %c2_79 = arith.constant 2 : index
    %c0_80 = arith.constant 0 : index
    %105 = vector.load %arg12[%c2_79, %c0_80] : memref<34x4xf32, #tpu.memory_space<vmem>>, vector<32x4xf32>
    %106 = arith.maximumf %103, %105 : vector<32x4xf32>
    %c0_81 = arith.constant 0 : index
    %c0_82 = arith.constant 0 : index
    %107 = vector.load %arg12[%c0_81, %c0_82] : memref<34x4xf32, #tpu.memory_space<vmem>>, vector<32x4xf32>
    tpu.vector_store %arg12[%c0_81, %c0_82], %106 {strides = array<i32>} : memref<34x4xf32, #tpu.memory_space<vmem>>, vector<32x4xf32>,
    %c0_83 = arith.constant 0 : index
    %c0_84 = arith.constant 0 : index
    %108 = tpu.strided_load %arg12[%c0_83, %c0_84] {strides = array<i32: 2, 1>} : memref<34x4xf32, #tpu.memory_space<vmem>>, vector<16x4xf32>
    %c0_85 = arith.constant 0 : index
    %c0_86 = arith.constant 0 : index
    %109 = vector.load %arg11[%c0_85, %c0_86] : memref<16x4xf32, #tpu.memory_space<vmem>>, vector<16x4xf32>
    tpu.vector_store %arg11[%c0_85, %c0_86], %108 {strides = array<i32>} : memref<16x4xf32, #tpu.memory_space<vmem>>, vector<16x4xf32>,
    return
  }
  func.func @transform_0(%arg0: i32) -> (i32, i32) {
    %c0_i32 = arith.constant 0 : i32
    %c0_i32_0 = arith.constant 0 : i32
    %c0_i32_1 = arith.constant 0 : i32
    return %c0_i32, %c0_i32_0 : i32, i32
  }
  func.func @transform_1(%arg0: i32) -> (i32, i32, i32) {
    %c0_i32 = arith.constant 0 : i32
    %c0_i32_0 = arith.constant 0 : i32
    %c0_i32_1 = arith.constant 0 : i32
    %c0_i32_2 = arith.constant 0 : i32
    return %c0_i32, %c0_i32_0, %c0_i32_1 : i32, i32, i32
  }
  func.func @transform_2(%arg0: i32) -> (i32, i32, i32) {
    %c0_i32 = arith.constant 0 : i32
    %c0_i32_0 = arith.constant 0 : i32
    %c0_i32_1 = arith.constant 0 : i32
    %c0_i32_2 = arith.constant 0 : i32
    return %c0_i32, %c0_i32_0, %c0_i32_1 : i32, i32, i32
  }
  func.func @transform_3(%arg0: i32) -> (i32, i32) {
    %c0_i32 = arith.constant 0 : i32
    %c0_i32_0 = arith.constant 0 : i32
    %c0_i32_1 = arith.constant 0 : i32
    return %c0_i32, %c0_i32_0 : i32, i32
  }
  func.func @transform_4(%arg0: i32) -> (i32, i32) {
    %c0_i32 = arith.constant 0 : i32
    %c0_i32_0 = arith.constant 0 : i32
    %c0_i32_1 = arith.constant 0 : i32
    return %c0_i32, %c0_i32_0 : i32, i32
  }
  func.func @transform_5(%arg0: i32) -> (i32, i32) {
    %c0_i32 = arith.constant 0 : i32
    %c0_i32_0 = arith.constant 0 : i32
    %c0_i32_1 = arith.constant 0 : i32
    return %c0_i32, %c0_i32_0 : i32, i32
  }
  func.func @transform_6(%arg0: i32) -> (i32, i32, i32) {
    %c0_i32 = arith.constant 0 : i32
    %c0_i32_0 = arith.constant 0 : i32
    %c0_i32_1 = arith.constant 0 : i32
    %c0_i32_2 = arith.constant 0 : i32
    return %c0_i32, %c0_i32_0, %c0_i32_1 : i32, i32, i32
  }
  func.func @transform_7(%arg0: i32) -> (i32, i32) {
    %c0_i32 = arith.constant 0 : i32
    %c0_i32_0 = arith.constant 0 : i32
    %c0_i32_1 = arith.constant 0 : i32
    return %c0_i32, %c0_i32_0 : i32, i32
  }
  func.func @transform_8(%arg0: i32) -> (i32, i32) {
    %c0_i32 = arith.constant 0 : i32
    %c0_i32_0 = arith.constant 0 : i32
    %c0_i32_1 = arith.constant 0 : i32
    return %c0_i32, %c0_i32_0 : i32, i32
  }
  func.func @transform_9(%arg0: i32) -> (i32, i32) {
    %c0_i32 = arith.constant 0 : i32
    %c0_i32_0 = arith.constant 0 : i32
    %c0_i32_1 = arith.constant 0 : i32
    return %c0_i32, %c0_i32_0 : i32, i32
  }
  func.func @transform_10(%arg0: i32) -> (i32, i32) {
    %c0_i32 = arith.constant 0 : i32
    %c0_i32_0 = arith.constant 0 : i32
    %c0_i32_1 = arith.constant 0 : i32
    return %c0_i32, %c0_i32_0 : i32, i32
  }
}

</mosaic_0001>

<bundles_post_ra>
// kernel: tpu_custom_call.1
= control target key start
LH: loop header
LB: loop body
LE: loop exit
PB: predicated region body
PF: predicated region fallthrough
CT: control target
= control target key end

     0   :  { %vm35_vm0 = vcmask 31744   ;;  %v1143_v0 = vmov 0   ;;  %vm101_vm1 = vcmask 1043456   ;;  %v1144_v3 = vmov 0.0   ;;  %s1379_s1 = inlined_call_operand.vmem [shape: f32[3,32,1], index: 1, kind: input, shape index: {}]   ;;  %s1380_s2 = inlined_call_operand.vmem [shape: f32[3,4,4], index: 2, kind: input, shape index: {}]   ;;  %s1381_s0 = inlined_call_operand.vmem [shape: f32[32,4], index: 0, kind: input, shape index: {}]   ;;  %s1382_s6 = inlined_call_operand.vmem [shape: f32[3,4,4], index: 6, kind: input, shape index: {}]   ;;  %s1383_s3 = inlined_call_operand.vmem [shape: f32[1,4], index: 3, kind: input, shape index: {}]   ;;  %s1384_s4 = inlined_call_operand.vmem [shape: f32[1,4], index: 4, kind: input, shape index: {}]   ;;  %s1385_s5 = inlined_call_operand.vmem [shape: f32[1,4], index: 5, kind: input, shape index: {}]   ;;  %s1386_s7 = inlined_call_operand.vmem [shape: f32[1,4], index: 7, kind: input, shape index: {}]   ;;  %s1387_s8 = inlined_call_operand.vmem [shape: f32[1,4], index: 8, kind: input, shape index: {}]   ;;  %s1388_s9 = inlined_call_operand.vmem [shape: f32[1,4], index: 9, kind: input, shape index: {}]   ;;  %s1389_s10 = inlined_call_operand.vmem [shape: f32[16,4], index: 10, kind: output, shape index: {}]  }
   0x1   :  { %1138 = vset.pattern.permute.xlu1 %v1143_v0  ;;  %1137 = vset.pattern.permute.xlu0 %v1143_v0  ;;  %v56_v1 = vld [vmem:[%s1379_s1 + $0x10] sm:$0xff]  ;;  %v54_v2 = vld [vmem:[%s1379_s1] sm:$0xff]  ;;  %36 = vst.msk [vmem:[#allocation2] sm:$0xff] %vm35_vm0, %v1144_v3  ;;  %37 = vst.msk [vmem:[#allocation2 + $0x8] sm:$0xff] %vm35_vm0, %v1144_v3  ;;  %vm40_vm2 = vcmask 25600  }
   0x2   :  { %38 = vst.msk [vmem:[#allocation2 + $0x10] sm:$0xff] %vm35_vm0, %v1144_v3  ;;  %39 = vst.msk [vmem:[#allocation2 + $0x18] sm:$0xff] %vm35_vm0, %v1144_v3  ;;  %70 = vperm.xlu1 %1138, %v56_v1   ;;  %60 = vperm.xlu0 %1137, %v54_v2   ;;  %v57_v4 = vld [vmem:[%s1379_s1 + $0x18] sm:$0xff]  ;;  %v55_v5 = vld [vmem:[%s1379_s1 + $0x8] sm:$0xff] }
   0x3   :  { %41 = vst.msk [vmem:[#allocation2 + $0x20] sm:$0x3] %vm40_vm2, %v1144_v3  ;;  %v995_v6 = vld [vmem:[%s1380_s2 + $0x4] sm:$0xf]  ;;  %v1228_v8 = vld [vmem:[%s1381_s0 + $0x8] sm:$0xff]  ;;  %v1241_v10 = vld [vmem:[%s1381_s0 + $0x10] sm:$0xff] }
   0x4   :  { %1071 = vmatprep.subr.msk.mxu0 %vm101_vm1, %v995_v6  ;;  %v1223_v7 = vld [vmem:[%s1381_s0] sm:$0xff]  ;;  %47 = vst.msk [vmem:[#allocation2 + $0x9] sm:$0xff] %vm35_vm0, %v1228_v8  ;;  %v1246_v11 = vld [vmem:[%s1381_s0 + $0x18] sm:$0xff]  ;;  %48 = vst.msk [vmem:[#allocation2 + $0x11] sm:$0xff] %vm35_vm0, %v1241_v10 }
   0x5   :  { %v82_v9 = vld [vmem:[%s1380_s2] sm:$0xf]  ;;  %1072 = vmatpush3.msk.msra.mxu0 %vm101_vm1, %v995_v6  ;;  %46 = vst.msk [vmem:[#allocation2 + $0x1] sm:$0xff] %vm35_vm0, %v1223_v7  ;;  %49 = vst.msk [vmem:[#allocation2 + $0x19] sm:$0xff] %vm35_vm0, %v1246_v11  ;;  %v1007_v12 = vld [vmem:[%s1379_s1 + $0x48] sm:$0xff] }
   0x6   :  { %75 = vperm.xlu1 %1138, %v57_v4   ;;  %65 = vperm.xlu0 %1137, %v55_v5   ;;  %v1006_v13 = vld [vmem:[%s1379_s1 + $0x40] sm:$0xff]  ;;  %v1009_v14 = vld [vmem:[%s1379_s1 + $0x58] sm:$0xff]  ;;  %v1008_v15 = vld [vmem:[%s1379_s1 + $0x50] sm:$0xff] }
   0x7   :  { %1079 = vmatprep.subr.msk.mxu0 %vm101_vm1, %v82_v9  ;;  %v1010_v19 = vld [vmem:[%s1380_s2 + $0x8] sm:$0xf]  ;;  %v1018_v45 = vld [vmem:[%s1382_s6 + $0x4] sm:$0xf]  ;;  %v1291_v46 = vld [vmem:[%s1382_s6] sm:$0xf] }
   0x8   :  { %1095 = vmatprep.subr.msk.mxu1 %vm101_vm1, %v1018_v45  ;;  %v1016_v47 = vld [vmem:[%s1383_s3] ss:$0 sm:$0xff] }
   0x9   :  { %1096 = vmatpush3.msk.msra.mxu1 %vm101_vm1, %v1018_v45 }
   0xa   :  { %306 = vperm.xlu1 %1138, %v1007_v12   ;;  %301 = vperm.xlu0 %1137, %v1006_v13  }
   0xb   :  { %v84_v17 = vld [vmem:[#allocation2 + $0x9] sm:$0xff]  ;;  %v85_v18 = vld [vmem:[#allocation2 + $0x11] sm:$0xff]  ;;  %1103 = vmatprep.subr.msk.mxu1 %vm101_vm1, %v1291_v46 }
   0xc   :  { %v83_v16 = vld [vmem:[#allocation2 + $0x1] sm:$0xff]  ;;  %v86_v20 = vld [vmem:[#allocation2 + $0x19] sm:$0xff]  ;;  %v52_v24 = vld [vmem:[#allocation2 + $0x10] sm:$0xff] }
   0xd   :  { %1073 = vmatprep.mubr.msk.f32.mxu0 %vm35_vm0, %v83_v16  ;;  %v50_v21 = vld [vmem:[#allocation2] sm:$0xff]  ;;  %v51_v26 = vld [vmem:[#allocation2 + $0x8] sm:$0xff]  ;;  %v53_v31 = vld [vmem:[#allocation2 + $0x18] sm:$0xff] }
   0xe   :  { %316 = vperm.xlu1 %1138, %v1009_v14   ;;  %311 = vperm.xlu0 %1137, %v1008_v15   ;;  %v290_v32 = vld [vmem:[#allocation2 + $0x2] sm:$0xff]  ;;  %v291_v37 = vld [vmem:[#allocation2 + $0xa] sm:$0xff]  ;;  %v292_v38 = vld [vmem:[#allocation2 + $0x12] sm:$0xff] }
   0xf   :  { %1074 = vmatmul.mubr.msk.f32.vlgmr.msra.gmra.mrb[0].mxu0 %vm35_vm0, %v84_v17  ;;  %v293_v43 = vld [vmem:[#allocation2 + $0x1a] sm:$0xff] }
  0x10   :  { %1080 = vmatpush3.msk.msra.mxu0 %vm101_vm1, %v82_v9  ;;  %1076 = vmatprep.mubr.msk.f32.mxu0 %vm35_vm0, %v85_v18 }
  0x11   :  { %1087 = vmatprep.subr.msk.mxu0 %vm101_vm1, %v1010_v19 }
  0x12   :  { %526 = vperm.xlu1 %1138, %v55_v5   ;;  %521 = vperm.xlu0 %1137, %v54_v2  }
  0x13   :  { %1077 = vmatmul.mubr.msk.f32.gmra.mrb[2].mxu0 %vm35_vm0, %v86_v20 }
  0x16   :  { %536 = vperm.xlu1 %1138, %v57_v4   ;;  %531 = vperm.xlu0 %1137, %v56_v1  }
  0x1a   :  { %765 = vperm.xlu1 %1138, %v1007_v12   ;;  %760 = vperm.xlu0 %1137, %v1006_v13  }
  0x1e   :  { %775 = vperm.xlu1 %1138, %v1009_v14   ;;  %770 = vperm.xlu0 %1137, %v1008_v15  }
  0x81   :  { %v71_v22 = vpop.permute.xlu1 %70  ;;  %v61_v23 = vpop.permute.xlu0 %60 }
  0x82   :  { %v78_v25 = vmul.f32 %v61_v23, %v50_v21  ;;  %v80_v27 = vmul.f32 %v71_v22, %v52_v24 }
  0x84   :  { %1081 = vmatprep.mubr.msk.f32.mxu0 %vm35_vm0, %v78_v25 }
  0x85   :  { %v76_v28 = vpop.permute.xlu1 %75  ;;  %v66_v29 = vpop.permute.xlu0 %65 }
  0x86   :  { %v79_v30 = vmul.f32 %v66_v29, %v51_v26  ;;  %v81_v35 = vmul.f32 %v76_v28, %v53_v31 }
  0x88   :  { %1082 = vmatmul.mubr.msk.f32.vlgmr.msra.gmra.mrb[0].mxu0 %vm35_vm0, %v79_v30 }
  0x89   :  { %1088 = vmatpush3.msk.msra.mxu0 %vm101_vm1, %v1010_v19  ;;  %v307_v33 = vpop.permute.xlu1 %306  ;;  %v302_v34 = vpop.permute.xlu0 %301  ;;  %1084 = vmatprep.mubr.msk.f32.mxu0 %vm35_vm0, %v80_v27 }
  0x8a   :  { %v319_v36 = vmul.f32 %v302_v34, %v290_v32  ;;  %v320_v40 = vmul.f32 %v307_v33, %v291_v37  ;;  %v480_v33 = vlaneseq }
  0x8c   :  { %1085 = vmatmul.mubr.msk.f32.gmra.mrb[2].mxu0 %vm35_vm0, %v81_v35  ;;  %v1306_v34 = vshrl.u32 %v480_v33, 7  ;;  %v478_v35 = vld [vmem:[%s1384_s4] sm:$0x1] }
  0x8d   :  { %v312_v39 = vpop.permute.xlu0 %311  ;;  %1089 = vmatprep.mubr.msk.f32.mxu0 %vm35_vm0, %v319_v36  ;;  %v317_v42 = vpop.permute.xlu1 %316 }
  0x8e   :  { %v321_v41 = vmul.f32 %v312_v39, %v292_v38  ;;  %v322_v44 = vmul.f32 %v317_v42, %v293_v43  ;;  %v482_v36 = vsub.s32 0, %v1306_v34 }
  0x90   :  { %1090 = vmatmul.mubr.msk.f32.vlgmr.msra.gmra.mrb[0].mxu0 %vm35_vm0, %v320_v40  ;;  %v1017_v40 = vld [vmem:[%s1385_s5] ss:$0 sm:$0xff] }
  0x91   :  { %1092 = vmatprep.mubr.msk.f32.mxu0 %vm35_vm0, %v321_v41 }
  0x94   :  { %1093 = vmatmul.mubr.msk.f32.gmra.mrb[2].mxu0 %vm35_vm0, %v322_v44 }
 0x163   :  { %v1091_v48 = vpop.f32.mrb[0].mxu0 }
 0x164   :  { %v437_v49 = vadd.f32 %v1091_v48, %v1016_v47  ;;  %v406_v50 = vpop.f32.mrb[1].mxu0 }
 0x165   :  { %v436_v51 = vadd.f32 %v1016_v47, %v406_v50 }
 0x166   :  { %v441_v52 = vsel %vm35_vm0, %v437_v49, 0.0 }
 0x167   :  { %v440_v53 = vsel %vm35_vm0, %v436_v51, 0.0  ;;  %v1094_v54 = vpop.f32.mrb[2].mxu0 }
 0x168   :  { %v442_v55 = vadd.f32 %v441_v52, %v440_v53  ;;  %v416_v56 = vpop.f32.mrb[3].mxu0  ;;  %v439_v57 = vadd.f32 %v1094_v54, %v1016_v47 }
 0x169   :  { %v438_v58 = vadd.f32 %v1016_v47, %v416_v56 }
 0x16a   :  { %v445_v61 = vsel %vm35_vm0, %v439_v57, 0.0 }
 0x16b   :  { %v443_v59 = vsel %vm35_vm0, %v438_v58, 0.0 }
 0x16c   :  { %v444_v60 = vadd.f32 %v443_v59, %v442_v55 }
 0x16e   :  { %v446_v62 = vadd.f32 %v445_v61, %v444_v60  ;;  %v527_v61 = vpop.permute.xlu1 %526 }
 0x170   :  { %v447_v63 = vrot.slane %v446_v62, 4 }
 0x172   :  { %v448_v0 = vadd.f32 %v447_v63, %v446_v62  ;;  %v1033_v62 = vld [vmem:[%s1382_s6 + $0x8] sm:$0xf] }
 0x174   :  { %v449_v1 = vrot.slane %v448_v0, 2 }
 0x176   :  { %v450_v2 = vadd.f32 %v449_v1, %v448_v0 }
 0x178   :  { %v451_v3 = vrot.slane %v450_v2, 1 }
 0x17a   :  { %v452_v4 = vadd.f32 %v451_v3, %v450_v2 }
 0x17c   :  { %v453_v5 = vmul.f32 0.03125, %v452_v4 }
 0x17e   :  { %v454_v6 = vsub.f32 %v436_v51, %v453_v5  ;;  %v455_v9 = vsub.f32 %v437_v49, %v453_v5  ;;  %v456_v12 = vsub.f32 %v438_v58, %v453_v5  ;;  %v457_v13 = vsub.f32 %v439_v57, %v453_v5  ;;  %v522_v58 = vpop.permute.xlu0 %521 }
 0x180   :  { %v458_v14 = vmul.f32 %v454_v6, %v454_v6  ;;  %v459_v15 = vmul.f32 %v455_v9, %v455_v9  ;;  %v460_v16 = vmul.f32 %v456_v12, %v456_v12  ;;  %v461_v17 = vmul.f32 %v457_v13, %v457_v13 }
 0x182   :  { %v462_v18 = vsel %vm35_vm0, %v458_v14, 0.0  ;;  %v463_v19 = vsel %vm35_vm0, %v459_v15, 0.0  ;;  %v465_v21 = vsel %vm35_vm0, %v460_v16, 0.0  ;;  %v467_v23 = vsel %vm35_vm0, %v461_v17, 0.0  ;;  %v532_v1 = vpop.permute.xlu0 %531 }
 0x183   :  { %v464_v20 = vadd.f32 %v463_v19, %v462_v18 }
 0x185   :  { %v466_v22 = vadd.f32 %v465_v21, %v464_v20 }
 0x186   :  { %v761_v14 = vpop.permute.xlu0 %760 }
 0x187   :  { %v468_v24 = vadd.f32 %v467_v23, %v466_v22 }
 0x189   :  { %v469_v25 = vrot.slane %v468_v24, 4 }
 0x18a   :  { %v771_v20 = vpop.permute.xlu0 %770 }
 0x18b   :  { %v470_v26 = vadd.f32 %v469_v25, %v468_v24 }
 0x18d   :  { %v471_v27 = vrot.slane %v470_v26, 2 }
 0x18f   :  { %v472_v28 = vadd.f32 %v471_v27, %v470_v26  ;;  %v1039_v26 = vld [vmem:[%s1386_s7] ss:$0 sm:$0xff] }
 0x191   :  { %v473_v29 = vrot.slane %v472_v28, 1 }
 0x193   :  { %v474_v30 = vadd.f32 %v473_v29, %v472_v28 }
 0x195   :  { %v475_v31 = vmul.f32 0.03125, %v474_v30 }
 0x197   :  { %v476_v32 = vadd.f32 1e-05, %v475_v31 }
 0x199   :  { %1139 = vrsqrt.f32 %v476_v32 }
 0x1a3   :  { %v1140_v37 = vpop.eup %1139 }
 0x1a4   :  { %v479_v38 = vmul.f32 %v1140_v37, %v478_v35 }
 0x1a6   :  { %v483_v39 = vrot.slane %v479_v38, %v482_v36 }
 0x1a8   :  { %v484_v41 = vmul.f32 %v483_v39, %v454_v6  ;;  %v485_v42 = vmul.f32 %v483_v39, %v455_v9  ;;  %v486_v43 = vmul.f32 %v483_v39, %v456_v12  ;;  %v487_v44 = vmul.f32 %v483_v39, %v457_v13  ;;  %v537_v6 = vpop.permute.xlu1 %536 }
 0x1aa   :  { %v495_v45 = vadd.f32 %v1017_v40, %v484_v41  ;;  %v496_v47 = vadd.f32 %v1017_v40, %v485_v42  ;;  %v497_v48 = vadd.f32 %v1017_v40, %v486_v43  ;;  %v498_v49 = vadd.f32 %v1017_v40, %v487_v44 }
 0x1ac   :  { %v499_v50 = vmul.f32 0.01, %v495_v45  ;;  %v500_v51 = vmul.f32 0.01, %v496_v47  ;;  %v501_v52 = vmul.f32 0.01, %v497_v48  ;;  %v766_v16 = vpop.permute.xlu1 %765 }
 0x1ad   :  { %v502_v53 = vmul.f32 0.01, %v498_v49 }
 0x1ae   :  { %v503_v54 = vmax.f32 %v495_v45, %v499_v50  ;;  %v504_v55 = vmax.f32 %v496_v47, %v500_v51  ;;  %v505_v56 = vmax.f32 %v497_v48, %v501_v52 }
 0x1af   :  { %v506_v57 = vmax.f32 %v498_v49, %v502_v53 }
 0x1b0   :  { %507 = vst.msk [vmem:[#allocation2 + $0x1] sm:$0xff] %vm35_vm0, %v503_v54  ;;  %508 = vst.msk [vmem:[#allocation2 + $0x9] sm:$0xff] %vm35_vm0, %v504_v55  ;;  %v776_v24 = vpop.permute.xlu1 %775 }
 0x1b1   :  { %509 = vst.msk [vmem:[#allocation2 + $0x11] sm:$0xff] %vm35_vm0, %v505_v56  ;;  %510 = vst.msk [vmem:[#allocation2 + $0x19] sm:$0xff] %vm35_vm0, %v506_v57 }
 0x1b7   :  { %v544_v59 = vld [vmem:[#allocation2 + $0x1] sm:$0xff]  ;;  %v545_v60 = vld [vmem:[#allocation2 + $0x9] sm:$0xff] }
 0x1b8   :  { %1097 = vmatprep.mubr.msk.f32.mxu1 %vm35_vm0, %v544_v59  ;;  %v546_v63 = vld [vmem:[#allocation2 + $0x11] sm:$0xff]  ;;  %v511_v0 = vld [vmem:[#allocation2] sm:$0xff]  ;;  %v512_v4 = vld [vmem:[#allocation2 + $0x8] sm:$0xff] }
 0x1b9   :  { %1098 = vmatmul.mubr.msk.f32.vlgmr.msra.gmra.mrb[0].mxu1 %vm35_vm0, %v545_v60  ;;  %v547_v2 = vld [vmem:[#allocation2 + $0x19] sm:$0xff]  ;;  %v539_v3 = vmul.f32 %v522_v58, %v511_v0  ;;  %v513_v5 = vld [vmem:[#allocation2 + $0x10] sm:$0xff]  ;;  %v540_v9 = vmul.f32 %v527_v61, %v512_v4 }
 0x1ba   :  { %1104 = vmatpush3.msk.msra.mxu1 %vm101_vm1, %v1291_v46  ;;  %1100 = vmatprep.mubr.msk.f32.mxu1 %vm35_vm0, %v546_v63  ;;  %v541_v12 = vmul.f32 %v532_v1, %v513_v5  ;;  %v514_v13 = vld [vmem:[#allocation2 + $0x18] sm:$0xff]  ;;  %v750_v46 = vld [vmem:[#allocation2 + $0x2] sm:$0xff]  ;;  %v751_v18 = vld [vmem:[#allocation2 + $0xa] sm:$0xff] }
 0x1bb   :  { %1111 = vmatprep.subr.msk.mxu1 %vm101_vm1, %v1033_v62  ;;  %v542_v15 = vmul.f32 %v537_v6, %v514_v13  ;;  %v778_v17 = vmul.f32 %v761_v14, %v750_v46  ;;  %v752_v19 = vld [vmem:[#allocation2 + $0x12] sm:$0xff]  ;;  %v779_v21 = vmul.f32 %v766_v16, %v751_v18  ;;  %v753_v23 = vld [vmem:[#allocation2 + $0x1a] sm:$0xff] }
 0x1bc   :  { %v780_v22 = vmul.f32 %v771_v20, %v752_v19  ;;  %v781_v25 = vmul.f32 %v776_v24, %v753_v23  ;;  %v937_v46 = vld [vmem:[%s1387_s8] sm:$0x1] }
 0x1bd   :  { %1101 = vmatmul.mubr.msk.f32.gmra.mrb[2].mxu1 %vm35_vm0, %v547_v2  ;;  %v1040_v18 = vld [vmem:[%s1388_s9] ss:$0 sm:$0xff] }
 0x1be   :  { %1105 = vmatprep.mubr.msk.f32.mxu1 %vm35_vm0, %v539_v3 }
 0x1c1   :  { %1106 = vmatmul.mubr.msk.f32.vlgmr.msra.gmra.mrb[0].mxu1 %vm35_vm0, %v540_v9 }
 0x1c2   :  { %1112 = vmatpush3.msk.msra.mxu1 %vm101_vm1, %v1033_v62  ;;  %1108 = vmatprep.mubr.msk.f32.mxu1 %vm35_vm0, %v541_v12 }
 0x1c5   :  { %1109 = vmatmul.mubr.msk.f32.gmra.mrb[2].mxu1 %vm35_vm0, %v542_v15 }
 0x1c6   :  { %1113 = vmatprep.mubr.msk.f32.mxu1 %vm35_vm0, %v778_v17 }
 0x1c9   :  { %1114 = vmatmul.mubr.msk.f32.vlgmr.msra.gmra.mrb[0].mxu1 %vm35_vm0, %v779_v21 }
 0x1ca   :  { %1116 = vmatprep.mubr.msk.f32.mxu1 %vm35_vm0, %v780_v22 }
 0x1cd   :  { %1117 = vmatmul.mubr.msk.f32.gmra.mrb[2].mxu1 %vm35_vm0, %v781_v25 }
 0x29c   :  { %v1115_v27 = vpop.f32.mrb[0].mxu1 }
 0x29d   :  { %v896_v28 = vadd.f32 %v1115_v27, %v1039_v26  ;;  %v865_v29 = vpop.f32.mrb[1].mxu1 }
 0x29e   :  { %v895_v30 = vadd.f32 %v1039_v26, %v865_v29 }
 0x29f   :  { %v900_v31 = vsel %vm35_vm0, %v896_v28, 0.0 }
 0x2a0   :  { %v899_v32 = vsel %vm35_vm0, %v895_v30, 0.0  ;;  %v1118_v33 = vpop.f32.mrb[2].mxu1 }
 0x2a1   :  { %v901_v35 = vadd.f32 %v900_v31, %v899_v32  ;;  %v875_v37 = vpop.f32.mrb[3].mxu1  ;;  %v898_v38 = vadd.f32 %v1118_v33, %v1039_v26 }
 0x2a2   :  { %v897_v39 = vadd.f32 %v1039_v26, %v875_v37 }
 0x2a3   :  { %v904_v42 = vsel %vm35_vm0, %v898_v38, 0.0 }
 0x2a4   :  { %v902_v40 = vsel %vm35_vm0, %v897_v39, 0.0 }
 0x2a5   :  { %v903_v41 = vadd.f32 %v902_v40, %v901_v35 }
 0x2a7   :  { %v905_v43 = vadd.f32 %v904_v42, %v903_v41 }
 0x2a9   :  { %v906_v44 = vrot.slane %v905_v43, 4 }
 0x2ab   :  { %v907_v45 = vadd.f32 %v906_v44, %v905_v43 }
 0x2ad   :  { %v908_v47 = vrot.slane %v907_v45, 2 }
 0x2af   :  { %v909_v48 = vadd.f32 %v908_v47, %v907_v45 }
 0x2b1   :  { %v910_v49 = vrot.slane %v909_v48, 1 }
 0x2b3   :  { %v911_v50 = vadd.f32 %v910_v49, %v909_v48 }
 0x2b5   :  { %v912_v51 = vmul.f32 0.03125, %v911_v50 }
 0x2b7   :  { %v913_v52 = vsub.f32 %v895_v30, %v912_v51  ;;  %v914_v53 = vsub.f32 %v896_v28, %v912_v51  ;;  %v915_v54 = vsub.f32 %v897_v39, %v912_v51  ;;  %v916_v55 = vsub.f32 %v898_v38, %v912_v51 }
 0x2b9   :  { %v917_v56 = vmul.f32 %v913_v52, %v913_v52  ;;  %v918_v57 = vmul.f32 %v914_v53, %v914_v53  ;;  %v919_v58 = vmul.f32 %v915_v54, %v915_v54  ;;  %v920_v59 = vmul.f32 %v916_v55, %v916_v55 }
 0x2bb   :  { %v921_v60 = vsel %vm35_vm0, %v917_v56, 0.0  ;;  %v922_v61 = vsel %vm35_vm0, %v918_v57, 0.0  ;;  %v924_v63 = vsel %vm35_vm0, %v919_v58, 0.0  ;;  %v926_v1 = vsel %vm35_vm0, %v920_v59, 0.0 }
 0x2bc   :  { %v923_v62 = vadd.f32 %v922_v61, %v921_v60 }
 0x2be   :  { %v925_v0 = vadd.f32 %v924_v63, %v923_v62 }
 0x2c0   :  { %v927_v2 = vadd.f32 %v926_v1, %v925_v0 }
 0x2c2   :  { %v928_v3 = vrot.slane %v927_v2, 4 }
 0x2c4   :  { %v929_v4 = vadd.f32 %v928_v3, %v927_v2 }
 0x2c6   :  { %v930_v5 = vrot.slane %v929_v4, 2 }
 0x2c8   :  { %v931_v6 = vadd.f32 %v930_v5, %v929_v4 }
 0x2ca   :  { %v932_v9 = vrot.slane %v931_v6, 1 }
 0x2cc   :  { %v933_v12 = vadd.f32 %v932_v9, %v931_v6 }
 0x2ce   :  { %v934_v13 = vmul.f32 0.03125, %v933_v12 }
 0x2d0   :  { %v935_v14 = vadd.f32 1e-05, %v934_v13 }
 0x2d2   :  { %1141 = vrsqrt.f32 %v935_v14 }
 0x2dc   :  { %v1142_v15 = vpop.eup %1141 }
 0x2dd   :  { %v938_v16 = vmul.f32 %v1142_v15, %v937_v46 }
 0x2df   :  { %v942_v17 = vrot.slane %v938_v16, %v482_v36 }
 0x2e1   :  { %v943_v19 = vmul.f32 %v942_v17, %v913_v52  ;;  %v944_v20 = vmul.f32 %v942_v17, %v914_v53  ;;  %v945_v21 = vmul.f32 %v942_v17, %v915_v54  ;;  %v946_v22 = vmul.f32 %v942_v17, %v916_v55 }
 0x2e3   :  { %v954_v23 = vadd.f32 %v1040_v18, %v943_v19  ;;  %v955_v24 = vadd.f32 %v1040_v18, %v944_v20  ;;  %v956_v25 = vadd.f32 %v1040_v18, %v945_v21  ;;  %v957_v26 = vadd.f32 %v1040_v18, %v946_v22 }
 0x2e5   :  { %v958_v27 = vadd.f32 %v954_v23, %v1223_v7  ;;  %v959_v28 = vadd.f32 %v955_v24, %v1228_v8  ;;  %v960_v29 = vadd.f32 %v956_v25, %v1241_v10  ;;  %v961_v34 = vadd.f32 %v957_v26, %v1246_v11 }
 0x2e7   :  { %v962_v36 = vmul.f32 0.01, %v958_v27  ;;  %v963_v30 = vmul.f32 0.01, %v959_v28  ;;  %v964_v31 = vmul.f32 0.01, %v960_v29 }
 0x2e8   :  { %v965_v32 = vmul.f32 0.01, %v961_v34 }
 0x2e9   :  { %v966_v33 = vmax.f32 %v958_v27, %v962_v36  ;;  %v967_v35 = vmax.f32 %v959_v28, %v963_v30  ;;  %v968_v37 = vmax.f32 %v960_v29, %v964_v31 }
 0x2ea   :  { %v969_v38 = vmax.f32 %v961_v34, %v965_v32 }
 0x2eb   :  { %970 = vst.msk [vmem:[#allocation2 + $0x1] sm:$0xff] %vm35_vm0, %v966_v33  ;;  %971 = vst.msk [vmem:[#allocation2 + $0x9] sm:$0xff] %vm35_vm0, %v967_v35 }
 0x2ec   :  { %972 = vst.msk [vmem:[#allocation2 + $0x11] sm:$0xff] %vm35_vm0, %v968_v37  ;;  %973 = vst.msk [vmem:[#allocation2 + $0x19] sm:$0xff] %vm35_vm0, %v969_v38 }
 0x2f2   :  { %v974_v7 = vld [vmem:[#allocation2 + $0x2] sm:$0xff] }
 0x2f3   :  { %v975_v8 = vld [vmem:[#allocation2 + $0xa] sm:$0xff]  ;;  %v976_v10 = vld [vmem:[#allocation2 + $0x12] sm:$0xff]  ;;  %v977_v11 = vld [vmem:[#allocation2 + $0x1a] sm:$0xff]  ;;  %v978_v39 = vmax.f32 %v966_v33, %v974_v7 }
 0x2f4   :  { %v979_v40 = vmax.f32 %v967_v35, %v975_v8  ;;  %v980_v41 = vmax.f32 %v968_v37, %v976_v10  ;;  %v981_v42 = vmax.f32 %v969_v38, %v977_v11 }
 0x2f5   :  { %982 = vst.msk [vmem:[#allocation2] sm:$0xff] %vm35_vm0, %v978_v39 }
 0x2f6   :  { %983 = vst.msk [vmem:[#allocation2 + $0x8] sm:$0xff] %vm35_vm0, %v979_v40  ;;  %984 = vst.msk [vmem:[#allocation2 + $0x10] sm:$0xff] %vm35_vm0, %v980_v41 }
 0x2f7   :  { %985 = vst.msk [vmem:[#allocation2 + $0x18] sm:$0xff] %vm35_vm0, %v981_v42 }
 0x2fd   :  { %v986_v43 = vld [vmem:[#allocation2] ss:$2 sm:$0xff] }
 0x2fe   :  { %v988_v44 = vld [vmem:[#allocation2 + $0x10] ss:$2 sm:$0xff]  ;;  %989 = vst.msk [vmem:[%s1389_s10] sm:$0xff] %vm35_vm0, %v986_v43 }
 0x2ff   :  { %990 = vst.msk [vmem:[%s1389_s10 + $0x8] sm:$0xff] %vm35_vm0, %v988_v44 }

</bundles_post_ra>
